<compile_context>
chip_gen: v6e
topology: v6e:2x2x1
jax: 0.10.0
libtpu: 0.0.40
codegen_flags: <defaults>
</compile_context>

<pallas_src>
import functools

import jax
import jax.numpy as jnp
from jax.experimental import pallas as pl
from jax.experimental.pallas import tpu as pltpu


# ----------------------------------------------------------------------------
# Kernel
# ----------------------------------------------------------------------------
def _channel_attention_kernel(x_ref, w1_ref, b1_ref, w2_ref, b2_ref, o_ref,
                              acc_ref, *, hw_true, hw_tile, chunk, b_tile,
                              num_k):
    """Grid = (B // b_tile, num_k)   (batch groups "parallel", k "arbitrary").

    x_ref : (b_tile, C, hw_tile)         w1: (C, Ch)   b1: (1, Ch)
    o_ref : (1, b_tile, C)               w2: (Ch, C)   b2: (1, C)
    acc_ref: (2*b_tile, C) f32 scratch (rows [0,b_tile)=sum, [b_tile,2b)=max)
    """
    k = pl.program_id(1)
    c = x_ref.shape[1]
    n_chunks = hw_tile // chunk

    @pl.when(k == 0)
    def _init():
        acc_ref[0:b_tile, :] = jnp.zeros((b_tile, c), jnp.float32)
        acc_ref[b_tile:2 * b_tile, :] = jnp.full((b_tile, c), -jnp.inf,
                                                 jnp.float32)

    def _accumulate(masked):
        # Walk the x block in lane chunks so the f32 working set stays at a
        # few vregs regardless of how big the DMA block is.
        def body(i, carry):
            s, m = carry
            start = i * chunk
            if not isinstance(i, int):
                start = pl.multiple_of(start, chunk)
            xc = x_ref[:, :, pl.ds(start, chunk)].astype(jnp.float32)
            if masked:
                pos = (k * hw_tile + start
                       + jax.lax.broadcasted_iota(jnp.int32, xc.shape, 2))
                valid = pos < hw_true
                xs = jnp.where(valid, xc, 0.0)       # select -> OOB junk safe
                xm = jnp.where(valid, xc, -jnp.inf)
            else:
                xs, xm = xc, xc
            return (s + jnp.sum(xs, axis=-1),
                    jnp.maximum(m, jnp.max(xm, axis=-1)))

        init = (jnp.zeros((b_tile, c), jnp.float32),
                jnp.full((b_tile, c), -jnp.inf, jnp.float32))
        if n_chunks == 1:
            s, m = body(0, init)
        elif n_chunks <= 8:
            s, m = init
            for i in range(n_chunks):
                s, m = body(i, (s, m))
        else:
            s, m = jax.lax.fori_loop(0, n_chunks, body, init)

        acc_ref[0:b_tile, :] += s
        acc_ref[b_tile:2 * b_tile, :] = jnp.maximum(
            acc_ref[b_tile:2 * b_tile, :], m)

    ragged = (hw_true % hw_tile) != 0
    if not ragged:
        _accumulate(False)                       # no mask work anywhere
    else:
        if num_k > 1:
            @pl.when(k < num_k - 1)
            def _steady():                       # plain accumulate, hot loop
                _accumulate(False)

        @pl.when(k == num_k - 1)
        def _edge():                             # masked edge block only
            _accumulate(True)

    @pl.when(k == num_k - 1)
    def _finalize():
        # avg = sum / true HW (not the padded extent); max row already final.
        acc_ref[0:b_tile, :] = acc_ref[0:b_tile, :] * (1.0 / hw_true)
        pooled = acc_ref[...]                                  # (2*b_tile, C)
        h = jnp.dot(pooled, w1_ref[...], preferred_element_type=jnp.float32)
        h = jnp.maximum(h + b1_ref[...], 0.0)                  # ReLU
        z = jnp.dot(h, w2_ref[...], preferred_element_type=jnp.float32)
        s = jax.nn.sigmoid(z + b2_ref[...])                    # (2*b_tile, C)
        out = s[0:b_tile, :] + s[b_tile:2 * b_tile, :]         # avg-path + max-path
        o_ref[...] = out.reshape(1, b_tile, c).astype(o_ref.dtype)


# ----------------------------------------------------------------------------
# Tiling heuristics (VMEM-aware, chip-generation aware)
# ----------------------------------------------------------------------------
def _vmem_capacity_bytes():
    try:
        return int(pltpu.get_tpu_info().vmem_capacity_bytes)
    except Exception:
        return 64 * 1024 * 1024       # conservative (v7x-sized) fallback


def _auto_hw_tile(C, HW, itemsize, tile_budget):
    """Lane-dim tile: multiple of 128, sized by bytes (not a lane cap)."""
    hw_full = int(pl.cdiv(HW, 128)) * 128
    max_lanes = max(128, (tile_budget // max(C * itemsize, 1)) // 128 * 128)
    return int(min(hw_full, max_lanes))


def _auto_b_tile(B, C, hw_tile, itemsize, tile_budget):
    """Fuse batches per grid step when one spatial tile covers the map."""
    block_budget = min(tile_budget, 4 * 1024 * 1024)   # ~4 MiB per DMA block
    per_batch = C * hw_tile * itemsize
    cap = max(1, int(block_budget // max(per_batch, 1)))
    cap = min(cap, B)
    if B >= 4:
        cap = min(cap, B // 2)        # keep >=2 parallel groups for megacore
    for d in range(cap, 0, -1):       # largest divisor of B <= cap
        if B % d == 0:
            return d
    return 1


def _pick_chunk(hw_tile, rows):
    """Chunk so b_tile*C*chunk f32 stays ~<=128 KiB (~32 vregs)."""
    cap = max(128, (32768 // max(rows, 1)) // 128 * 128)
    if hw_tile <= cap:
        return hw_tile
    for c in (2048, 1024, 512, 256, 128):
        if c <= cap and hw_tile % c == 0:
            return c
    return 128                        # hw_tile is always a multiple of 128


# ----------------------------------------------------------------------------
# Wrapper
# ----------------------------------------------------------------------------
def channel_attention(x, w1, b1, w2, b2, *, hw_tile=None, b_tile=None):
    """x: (B, C, H, W) NCHW.  Returns (B, C, 1, 1), matching PyTorch output."""
    B, C, H, W = x.shape
    HW = H * W
    Ch = w1.shape[1]
    itemsize = x.dtype.itemsize

    vmem_cap = _vmem_capacity_bytes()
    # x double-buffer pair capped at min(VMEM/4, 32 MiB) -> per-tile budget.
    tile_budget = min(vmem_cap // 4, 32 * 1024 * 1024) // 2
    vmem_limit = int(max(32 * 1024 * 1024,
                         min(vmem_cap * 3 // 4, 64 * 1024 * 1024)))

    if hw_tile is None:
        hw_tile = _auto_hw_tile(C, HW, itemsize, tile_budget)
    hw_tile = max(128, (int(hw_tile) // 128) * 128)
    num_k = int(pl.cdiv(HW, hw_tile))

    if b_tile is None:
        b_tile = _auto_b_tile(B, C, hw_tile, itemsize, tile_budget) \
            if num_k == 1 else 1
    b_tile = int(b_tile)
    if num_k > 1 or b_tile < 1 or (B % b_tile) != 0:
        b_tile = 1
    G = B // b_tile

    chunk = _pick_chunk(hw_tile, b_tile * C)

    # No host-side padding of x: the ragged trailing block is masked in-kernel.
    x_flat = x.reshape(B, C, HW)
    b1_2d = b1.reshape(1, Ch)
    b2_2d = b2.reshape(1, C)

    kernel = functools.partial(_channel_attention_kernel,
                               hw_true=HW, hw_tile=hw_tile, chunk=chunk,
                               b_tile=b_tile, num_k=num_k)

    cost = pl.CostEstimate(
        flops=2 * B * C * HW + 8 * B * C * Ch,        # pooling + tiny MLP
        transcendentals=2 * B * C,                    # sigmoid
        bytes_accessed=(B * C * HW * itemsize         # x stream (dominant)
                        + (C * Ch + Ch + Ch * C + C) * 4
                        + B * C * itemsize),
    )

    out = pl.pallas_call(
        kernel,
        out_shape=jax.ShapeDtypeStruct((G, b_tile, C), x.dtype),
        grid_spec=pltpu.PrefetchScalarGridSpec(
            num_scalar_prefetch=0,
            grid=(G, num_k),                          # reduction axis last
            in_specs=[
                pl.BlockSpec((b_tile, C, hw_tile), lambda b, k: (b, 0, k)),
                # Constant block index -> weights stay resident in VMEM.
                pl.BlockSpec((C, Ch), lambda b, k: (0, 0)),
                pl.BlockSpec((1, Ch), lambda b, k: (0, 0)),
                pl.BlockSpec((Ch, C), lambda b, k: (0, 0)),
                pl.BlockSpec((1, C), lambda b, k: (0, 0)),
            ],
            out_specs=pl.BlockSpec((1, b_tile, C), lambda b, k: (b, 0, 0)),
            scratch_shapes=[
                pltpu.VMEM((2 * b_tile, C), jnp.float32),   # sums ; maxes
            ],
        ),
        compiler_params=pltpu.CompilerParams(
            dimension_semantics=("parallel", "arbitrary"),
            vmem_limit_bytes=vmem_limit,
        ),
        cost_estimate=cost,
    )(x_flat, w1, b1_2d, w2, b2_2d)

    # (G, b_tile, C) -> (B, C) -> .unsqueeze(-1).unsqueeze(-1)
    return out.reshape(B, C, 1, 1)


# ----------------------------------------------------------------------------
# Pure-JAX reference
# ----------------------------------------------------------------------------
def _reference(x, w1, b1, w2, b2):
    avg = jnp.mean(x, axis=(2, 3))
    mx = jnp.max(x, axis=(2, 3))

    def fc(p):
        h = jnp.maximum(p @ w1 + b1, 0.0)
        return jax.nn.sigmoid(h @ w2 + b2)

    return (fc(avg) + fc(mx))[:, :, None, None]


if __name__ == "__main__":
    # Module hyperparams: channels=32, reduction=16 -> hidden=2
    B, C = 2, 32
    reduction = 16
    Ch = C // reduction

    key = jax.random.PRNGKey(0)
    kx1, kx2, kx3, k1, k2, k3, k4 = jax.random.split(key, 7)

    # Linear weights stored as (in, out) = transpose of torch's (out, in).
    w1 = jax.random.normal(k1, (C, Ch), dtype=jnp.float32) * 0.1
    b1 = jax.random.normal(k2, (Ch,), dtype=jnp.float32) * 0.1
    w2 = jax.random.normal(k3, (Ch, C), dtype=jnp.float32) * 0.1
    b2 = jax.random.normal(k4, (C,), dtype=jnp.float32) * 0.1

    # Case 1: single spatial tile, batch-fused (b_tile=2), no ragged tail.
    x1 = jax.random.normal(kx1, (B, C, 16, 16), dtype=jnp.float32)
    out1 = jax.block_until_ready(channel_attention(x1, w1, b1, w2, b2))
    ref1 = _reference(x1, w1, b1, w2, b2)
    assert out1.shape == (B, C, 1, 1), out1.shape
    assert jnp.allclose(out1, ref1, atol=1e-5, rtol=1e-5), "case1 mismatch"

    # Case 2: multi-tile spatial reduction, masked ragged last tile, no pad.
    x2 = jax.random.normal(kx2, (B, C, 20, 20), dtype=jnp.float32)
    out2 = jax.block_until_ready(
        channel_attention(x2, w1, b1, w2, b2, hw_tile=128))
    ref2 = _reference(x2, w1, b1, w2, b2)
    assert out2.shape == (B, C, 1, 1), out2.shape
    assert jnp.allclose(out2, ref2, atol=1e-5, rtol=1e-5), "case2 mismatch"

    # Case 3: batch-fused groups (B=4 -> 2 groups of 2) + ragged single tile.
    x3 = jax.random.normal(kx3, (4, C, 8, 8), dtype=jnp.float32)
    out3 = jax.block_until_ready(channel_attention(x3, w1, b1, w2, b2))
    ref3 = _reference(x3, w1, b1, w2, b2)
    assert out3.shape == (4, C, 1, 1), out3.shape
    assert jnp.allclose(out3, ref3, atol=1e-5, rtol=1e-5), "case3 mismatch"

    print("KERNEL_OK")
</pallas_src>

<mosaic_0001>
module attributes {stable_mosaic.version = 11 : i64} {
  func.func @_channel_attention_kernel(%arg0: i32, %arg1: i32, %arg2: memref<2x32x256xf32, #tpu.memory_space<vmem>>, %arg3: memref<32x2xf32, #tpu.memory_space<vmem>>, %arg4: memref<1x2xf32, #tpu.memory_space<vmem>>, %arg5: memref<2x32xf32, #tpu.memory_space<vmem>>, %arg6: memref<1x32xf32, #tpu.memory_space<vmem>>, %arg7: memref<1x2x32xf32, #tpu.memory_space<vmem>>, %arg8: memref<4x32xf32, #tpu.memory_space<vmem>>) attributes {dimension_semantics = [#tpu.dimension_semantics<parallel>, #tpu.dimension_semantics<arbitrary>], iteration_bounds = array<i64: 1, 1>, scalar_prefetch = 0 : i64, scratch_operands = 1 : i64, tpu.core_type = #tpu.core_type<tc>, window_params = [{transform_indices = @transform_0, window_bounds = array<i64: 2, 32, 256>}, {pipeline_mode = #tpu.pipeline_mode<synchronous>, transform_indices = @transform_1, window_bounds = array<i64: 32, 2>}, {pipeline_mode = #tpu.pipeline_mode<synchronous>, transform_indices = @transform_2, window_bounds = array<i64: 1, 2>}, {pipeline_mode = #tpu.pipeline_mode<synchronous>, transform_indices = @transform_3, window_bounds = array<i64: 2, 32>}, {pipeline_mode = #tpu.pipeline_mode<synchronous>, transform_indices = @transform_4, window_bounds = array<i64: 1, 32>}, {transform_indices = @transform_5, window_bounds = array<i64: 1, 2, 32>}]} {
    %c0_i32 = arith.constant 0 : i32
    %0 = arith.cmpi eq, %arg1, %c0_i32 : i32
    %1 = arith.extui %0 : i1 to i32
    %c0_i32_0 = arith.constant 0 : i32
    %2 = arith.cmpi ne, %1, %c0_i32_0 : i32
    scf.if %2 {
      %cst_15 = arith.constant 0.000000e+00 : f32
      %19 = vector.broadcast %cst_15 : f32 to vector<2x32xf32>
      %c0_16 = arith.constant 0 : index
      %c0_17 = arith.constant 0 : index
      %20 = vector.load %arg8[%c0_16, %c0_17] : memref<4x32xf32, #tpu.memory_space<vmem>>, vector<2x32xf32>
      tpu.vector_store %arg8[%c0_16, %c0_17], %19 {strides = array<i32>} : memref<4x32xf32, #tpu.memory_space<vmem>>, vector<2x32xf32>,
      %cst_18 = arith.constant 0xFF800000 : f32
      %21 = vector.broadcast %cst_18 : f32 to vector<2x32xf32>
      %c2_19 = arith.constant 2 : index
      %c0_20 = arith.constant 0 : index
      %22 = vector.load %arg8[%c2_19, %c0_20] : memref<4x32xf32, #tpu.memory_space<vmem>>, vector<2x32xf32>
      tpu.vector_store %arg8[%c2_19, %c0_20], %21 {strides = array<i32>} : memref<4x32xf32, #tpu.memory_space<vmem>>, vector<2x32xf32>,
    } else {
    }
    %cst = arith.constant 0.000000e+00 : f32
    %3 = vector.broadcast %cst : f32 to vector<2x32xf32>
    %cst_1 = arith.constant 0xFF800000 : f32
    %4 = vector.broadcast %cst_1 : f32 to vector<2x32xf32>
    %c0 = arith.constant 0 : index
    %c0_2 = arith.constant 0 : index
    %c0_3 = arith.constant 0 : index
    %5 = vector.load %arg2[%c0, %c0_2, %c0_3] : memref<2x32x256xf32, #tpu.memory_space<vmem>>, vector<2x32x256xf32>
    %cst_4 = arith.constant dense<0.000000e+00> : vector<2x32xf32>
    %6 = vector.multi_reduction <add>, %5, %cst_4 [2] : vector<2x32x256xf32> to vector<2x32xf32>
    %7 = arith.addf %3, %6 : vector<2x32xf32>
    %cst_5 = arith.constant dense<0xFF800000> : vector<2x32xf32>
    %8 = vector.multi_reduction <maximumf>, %5, %cst_5 [2] : vector<2x32x256xf32> to vector<2x32xf32>
    %9 = arith.maximumf %4, %8 : vector<2x32xf32>
    %c0_6 = arith.constant 0 : index
    %c0_7 = arith.constant 0 : index
    %10 = vector.load %arg8[%c0_6, %c0_7] : memref<4x32xf32, #tpu.memory_space<vmem>>, vector<2x32xf32>
    %11 = arith.addf %10, %7 : vector<2x32xf32>
    %c0_8 = arith.constant 0 : index
    %c0_9 = arith.constant 0 : index
    %12 = vector.load %arg8[%c0_8, %c0_9] : memref<4x32xf32, #tpu.memory_space<vmem>>, vector<2x32xf32>
    tpu.vector_store %arg8[%c0_8, %c0_9], %11 {strides = array<i32>} : memref<4x32xf32, #tpu.memory_space<vmem>>, vector<2x32xf32>,
    %c2 = arith.constant 2 : index
    %c0_10 = arith.constant 0 : index
    %13 = vector.load %arg8[%c2, %c0_10] : memref<4x32xf32, #tpu.memory_space<vmem>>, vector<2x32xf32>
    %14 = arith.maximumf %13, %9 : vector<2x32xf32>
    %c2_11 = arith.constant 2 : index
    %c0_12 = arith.constant 0 : index
    %15 = vector.load %arg8[%c2_11, %c0_12] : memref<4x32xf32, #tpu.memory_space<vmem>>, vector<2x32xf32>
    tpu.vector_store %arg8[%c2_11, %c0_12], %14 {strides = array<i32>} : memref<4x32xf32, #tpu.memory_space<vmem>>, vector<2x32xf32>,
    %c0_i32_13 = arith.constant 0 : i32
    %16 = arith.cmpi eq, %arg1, %c0_i32_13 : i32
    %17 = arith.extui %16 : i1 to i32
    %c0_i32_14 = arith.constant 0 : i32
    %18 = arith.cmpi ne, %17, %c0_i32_14 : i32
    scf.if %18 {
      %c0_15 = arith.constant 0 : index
      %c0_16 = arith.constant 0 : index
      %19 = vector.load %arg8[%c0_15, %c0_16] : memref<4x32xf32, #tpu.memory_space<vmem>>, vector<2x32xf32>
      %cst_17 = arith.constant 3.906250e-03 : f32
      %20 = vector.broadcast %cst_17 : f32 to vector<2x32xf32>
      %21 = arith.mulf %19, %20 : vector<2x32xf32>
      %c0_18 = arith.constant 0 : index
      %c0_19 = arith.constant 0 : index
      %22 = vector.load %arg8[%c0_18, %c0_19] : memref<4x32xf32, #tpu.memory_space<vmem>>, vector<2x32xf32>
      tpu.vector_store %arg8[%c0_18, %c0_19], %21 {strides = array<i32>} : memref<4x32xf32, #tpu.memory_space<vmem>>, vector<2x32xf32>,
      %c0_20 = arith.constant 0 : index
      %c0_21 = arith.constant 0 : index
      %23 = vector.load %arg8[%c0_20, %c0_21] : memref<4x32xf32, #tpu.memory_space<vmem>>, vector<4x32xf32>
      %c0_22 = arith.constant 0 : index
      %c0_23 = arith.constant 0 : index
      %24 = vector.load %arg3[%c0_22, %c0_23] : memref<32x2xf32, #tpu.memory_space<vmem>>, vector<32x2xf32>
      %cst_24 = arith.constant dense<0.000000e+00> : vector<4x2xf32>
      %25 = tpu.matmul %23, %24, %cst_24 {dimension_numbers = #tpu.dot_dimension_numbers<[1], [0], [0], [1], [0, 0, 1, 1], [], []>} : vector<4x32xf32>, vector<32x2xf32>, vector<4x2xf32> -> vector<4x2xf32>
      %c0_25 = arith.constant 0 : index
      %c0_26 = arith.constant 0 : index
      %26 = vector.load %arg4[%c0_25, %c0_26] : memref<1x2xf32, #tpu.memory_space<vmem>>, vector<1x2xf32>
      %27 = vector.broadcast %26 : vector<1x2xf32> to vector<4x2xf32>
      %28 = arith.addf %25, %27 : vector<4x2xf32>
      %cst_27 = arith.constant 0.000000e+00 : f32
      %29 = vector.broadcast %cst_27 : f32 to vector<4x2xf32>
      %30 = arith.maximumf %28, %29 : vector<4x2xf32>
      %c0_28 = arith.constant 0 : index
      %c0_29 = arith.constant 0 : index
      %31 = vector.load %arg5[%c0_28, %c0_29] : memref<2x32xf32, #tpu.memory_space<vmem>>, vector<2x32xf32>
      %cst_30 = arith.constant dense<0.000000e+00> : vector<4x32xf32>
      %32 = tpu.matmul %30, %31, %cst_30 {dimension_numbers = #tpu.dot_dimension_numbers<[1], [0], [0], [1], [0, 0, 1, 1], [], []>} : vector<4x2xf32>, vector<2x32xf32>, vector<4x32xf32> -> vector<4x32xf32>
      %c0_31 = arith.constant 0 : index
      %c0_32 = arith.constant 0 : index
      %33 = vector.load %arg6[%c0_31, %c0_32] : memref<1x32xf32, #tpu.memory_space<vmem>>, vector<1x32xf32>
      %34 = vector.broadcast %33 : vector<1x32xf32> to vector<4x32xf32>
      %35 = arith.addf %32, %34 : vector<4x32xf32>
      %36 = arith.negf %35 : vector<4x32xf32>
      %37 = math.exp %36 : vector<4x32xf32>
      %cst_33 = arith.constant 1.000000e+00 : f32
      %38 = vector.broadcast %cst_33 : f32 to vector<4x32xf32>
      %39 = arith.addf %38, %37 : vector<4x32xf32>
      %40 = arith.divf %38, %39 : vector<4x32xf32>
      %41 = vector.extract_strided_slice %40 {offsets = [0, 0], sizes = [2, 32], strides = [1, 1]} : vector<4x32xf32> to vector<2x32xf32>
      %42 = vector.extract_strided_slice %40 {offsets = [2, 0], sizes = [2, 32], strides = [1, 1]} : vector<4x32xf32> to vector<2x32xf32>
      %43 = arith.addf %41, %42 : vector<2x32xf32>
      %44 = vector.shape_cast %43 : vector<2x32xf32> to vector<1x2x32xf32>
      %c0_34 = arith.constant 0 : index
      %c0_35 = arith.constant 0 : index
      %c0_36 = arith.constant 0 : index
      %45 = vector.load %arg7[%c0_34, %c0_35, %c0_36] : memref<1x2x32xf32, #tpu.memory_space<vmem>>, vector<1x2x32xf32>
      tpu.vector_store %arg7[%c0_34, %c0_35, %c0_36], %44 {strides = array<i32>} : memref<1x2x32xf32, #tpu.memory_space<vmem>>, vector<1x2x32xf32>,
    } else {
    }
    return
  }
  func.func @transform_0(%arg0: i32, %arg1: i32) -> (i32, i32, i32) {
    %c0_i32 = arith.constant 0 : i32
    %c0_i32_0 = arith.constant 0 : i32
    return %arg0, %c0_i32, %arg1 : i32, i32, i32
  }
  func.func @transform_1(%arg0: i32, %arg1: i32) -> (i32, i32) {
    %c0_i32 = arith.constant 0 : i32
    %c0_i32_0 = arith.constant 0 : i32
    %c0_i32_1 = arith.constant 0 : i32
    return %c0_i32, %c0_i32_0 : i32, i32
  }
  func.func @transform_2(%arg0: i32, %arg1: i32) -> (i32, i32) {
    %c0_i32 = arith.constant 0 : i32
    %c0_i32_0 = arith.constant 0 : i32
    %c0_i32_1 = arith.constant 0 : i32
    return %c0_i32, %c0_i32_0 : i32, i32
  }
  func.func @transform_3(%arg0: i32, %arg1: i32) -> (i32, i32) {
    %c0_i32 = arith.constant 0 : i32
    %c0_i32_0 = arith.constant 0 : i32
    %c0_i32_1 = arith.constant 0 : i32
    return %c0_i32, %c0_i32_0 : i32, i32
  }
  func.func @transform_4(%arg0: i32, %arg1: i32) -> (i32, i32) {
    %c0_i32 = arith.constant 0 : i32
    %c0_i32_0 = arith.constant 0 : i32
    %c0_i32_1 = arith.constant 0 : i32
    return %c0_i32, %c0_i32_0 : i32, i32
  }
  func.func @transform_5(%arg0: i32, %arg1: i32) -> (i32, i32, i32) {
    %c0_i32 = arith.constant 0 : i32
    %c0_i32_0 = arith.constant 0 : i32
    %c0_i32_1 = arith.constant 0 : i32
    return %arg0, %c0_i32, %c0_i32_0 : i32, i32, i32
  }
}

</mosaic_0001>

<bundles_post_ra>
// kernel: tpu_custom_call.1
= control target key start
LH: loop header
LB: loop body
LE: loop exit
PB: predicated region body
PF: predicated region fallthrough
CT: control target
= control target key end

     0   :  { %10 = vsyncpa [#allocation4], 0  ;;  %s599_s0 = inlined_call_operand.hbm [shape: f32[2,32,256], index: 0, kind: input, shape index: {}]   ;;  %s600_s1 = inlined_call_operand.vmem [shape: f32[32,2], index: 1, kind: input, shape index: {}]   ;;  %s601_s2 = inlined_call_operand.vmem [shape: f32[1,2], index: 2, kind: input, shape index: {}]   ;;  %s602_s3 = inlined_call_operand.vmem [shape: f32[2,32], index: 3, kind: input, shape index: {}]   ;;  %s603_s4 = inlined_call_operand.vmem [shape: f32[1,32], index: 4, kind: input, shape index: {}]   ;;  %s604_s5 = inlined_call_operand.hbm [shape: f32[1,2,32], index: 5, kind: output, shape index: {}]  }
   0x1   :  { %11 = vsyncpa [#allocation5], 0  ;;  %s515_s18 = smov [#allocation3]  }
   0x2   :  { %s17_s19 = sshll.u32 %s515_s18, 4  ;;  %s18_s19 = int_to_ptr.vmem [resolvable:$true] %s17_s19 }
   0x3   :  { %s479_s20 = scalar_lea.vmem %s18_s19, 2048  ;;  %p484_p1 = scmp.lt.s32.totalorder %s18_s19, %s18_s19 }
   0x4   :  { %p480_p0 = scmp.ne.s32.totalorder %s18_s19, %s479_s20  ;;  %p485_p2 = scmp.lt.s32.totalorder %s479_s20, %s479_s20 }
   0x6   :  { %p486_p3 = por %p485_p2, %p484_p1 }
   0x8   :  { %p487_p4 = pnand %p486_p3, %p480_p0 }
   0xa   :  { %490 = shalt.err (!%p487_p4)
}
   0xb   :  { %s516_s21 = smov 256   ;;  %s517_s22 = smov 16  }
   0xc   :  { %23 = dma.hbm_to_vmem [thread:$0]  %s599_s0, 2048, %s18_s19, [#allocation4], %s516_s21, %s516_s21, %s517_s22  }
   0xd   :  { %511 = dma.done.wait [#allocation4], 2048  }
   0xe   :  { %512 = vsyncadd [#allocation4], 4294965248  ;;  %v50_v0 = vld [vmem:[#allocation3 + $0x40] sm:$0xff]  ;;  %v51_v1 = vld [vmem:[#allocation3 + $0x48] sm:$0xff]  ;;  %vm39_vm0 = vcmask 254976   ;;  %v518_v28 = vmov 0.0   ;;  %v123_v38 = vlaneseq }
   0xf   :  { %v42_v2 = vld [vmem:[#allocation3] sm:$0xff]  ;;  %v70_v3 = vadd.f32 %v51_v1, %v50_v0  ;;  %v43_v4 = vld [vmem:[#allocation3 + $0x8] sm:$0xff]  ;;  %v52_v5 = vld [vmem:[#allocation3 + $0x50] sm:$0xff]  ;;  %v102_v27 = vmax.f32 %v50_v0, %v51_v1  ;;  %40 = vst.msk [vmem:[#allocation2] sm:$0x3] %vm39_vm0, %v518_v28  ;;  %444 = vmatprep.subr.mxu0 %v518_v28  ;;  %455 = vmatprep.subr.mxu1 %v518_v28  ;;  %v519_v33 = vmov -inf  }
  0x10   :  { %v53_v6 = vld [vmem:[#allocation3 + $0x58] sm:$0xff]  ;;  %v58_v7 = vadd.f32 %v43_v4, %v42_v2  ;;  %v44_v8 = vld [vmem:[#allocation3 + $0x10] sm:$0xff]  ;;  %v54_v12 = vld [vmem:[#allocation3 + $0x60] sm:$0xff]  ;;  %v90_v25 = vmax.f32 %v42_v2, %v43_v4  ;;  %41 = vst.msk [vmem:[#allocation2 + $0x2] sm:$0x3] %vm39_vm0, %v519_v33  ;;  %vm520_vm1 = vmmov 0  }
  0x11   :  { %v45_v9 = vld [vmem:[#allocation3 + $0x18] sm:$0xff]  ;;  %71 = vadd.xlane.f32.xlu1 %v70_v3  ;;  %v73_v10 = vadd.f32 %v53_v6, %v52_v5  ;;  %v55_v13 = vld [vmem:[#allocation3 + $0x68] sm:$0xff]  ;;  %v46_v14 = vld [vmem:[#allocation3 + $0x20] sm:$0xff]  ;;  %v105_v26 = vmax.f32 %v52_v5, %v53_v6  ;;  %452 = vmatprep.mubr.msk.f32.mxu0 %vm520_vm1, %v518_v28  ;;  %v124_v39 = vand.u32 127, %v123_v38  ;;  %v126_v44 = vshrl.u32 %v123_v38, 7 }
  0x12   :  { %59 = vadd.xlane.f32.xlu0 %v58_v7  ;;  %v61_v11 = vadd.f32 %v45_v9, %v44_v8  ;;  %v47_v15 = vld [vmem:[#allocation3 + $0x28] sm:$0xff]  ;;  %v76_v16 = vadd.f32 %v55_v13, %v54_v12  ;;  %v56_v18 = vld [vmem:[#allocation3 + $0x70] sm:$0xff]  ;;  %v57_v19 = vld [vmem:[#allocation3 + $0x78] sm:$0xff]  ;;  %v93_v24 = vmax.f32 %v44_v8, %v45_v9  ;;  %v108_v29 = vmax.f32 %v54_v12, %v55_v13 }
  0x13   :  { %v64_v17 = vadd.f32 %v47_v15, %v46_v14  ;;  %v48_v20 = vld [vmem:[#allocation3 + $0x30] sm:$0xff]  ;;  %v49_v21 = vld [vmem:[#allocation3 + $0x38] sm:$0xff]  ;;  %v79_v22 = vadd.f32 %v57_v19, %v56_v18  ;;  %v96_v30 = vmax.f32 %v46_v14, %v47_v15  ;;  %v111_v31 = vmax.f32 %v56_v18, %v57_v19  ;;  %v234_v36 = vld [vmem:[%s600_s1 + $0x8] sm:$0xff]  ;;  %457 = vmatprep.mubr.msk.f32.mxu1 %vm520_vm1, %v518_v28 }
  0x14   :  { %v67_v23 = vadd.f32 %v49_v21, %v48_v20  ;;  %v99_v32 = vmax.f32 %v48_v20, %v49_v21  ;;  %v236_v34 = vld [vmem:[%s600_s1 + $0x18] sm:$0xff]  ;;  %v235_v35 = vld [vmem:[%s600_s1 + $0x10] sm:$0xff]  ;;  %v233_v37 = vld [vmem:[%s600_s1] sm:$0xff]  ;;  %v129_v42 = vadd.s32 4294967288, %v124_v39  ;;  %v136_v43 = vadd.s32 4294967280, %v124_v39 }
  0x15   :  { %74 = vadd.xlane.f32.xlu1 %v73_v10  ;;  %445 = vmatpush3.msra.mxu0 %v236_v34  ;;  %v143_v48 = vadd.s32 4294967272, %v124_v39  ;;  %v127_v50 = vsub.s32 %v124_v39, %v126_v44  ;;  %vm134_vm2 = vcmask 130112   ;;  %vm141_vm3 = vcmask 195712   ;;  %v431_v38 = vld [vmem:[%s601_s2] ss:$0 sm:$0xff]  ;;  %s521_s2 = smov [#allocation6]  }
  0x16   :  { %62 = vadd.xlane.f32.xlu0 %v61_v11  ;;  %446 = vmatprep.subr.mxu0 %v518_v28  ;;  %v132_v46 = vsub.s32 %v129_v42, %v126_v44  ;;  %v139_v49 = vsub.s32 %v136_v43, %v126_v44  ;;  %vm148_vm4 = vcmask 261312   ;;  %vm169_vm5 = vcmask 1041409   ;;  %v114_v5 = vld [vmem:[#allocation2] sm:$0x3] }
  0x17   :  { %447 = vmatpush3.msra.mxu0 %v235_v35  ;;  %v146_v54 = vsub.s32 %v143_v48, %v126_v44  ;;  %vm244_vm6 = vcmask 261120   ;;  %vm331_vm7 = vcmask 1041408   ;;  %vm327_vm8 = vcmask 15360   ;;  %v433_v43 = vld [vmem:[%s603_s4] ss:$0 sm:$0xff] }
  0x18   :  { %448 = vmatprep.subr.mxu0 %v518_v28 }
  0x19   :  { %77 = vadd.xlane.f32.xlu1 %v76_v16  ;;  %449 = vmatpush3.msra.mxu0 %v234_v36 }
  0x1a   :  { %65 = vadd.xlane.f32.xlu0 %v64_v17  ;;  %450 = vmatprep.subr.mxu0 %v518_v28 }
  0x1b   :  { %451 = vmatpush3.msra.mxu0 %v233_v37  ;;  %v319_v37 = vld [vmem:[%s602_s3] sm:$0x3]  ;;  %s422_s3 = sshll.u32 %s521_s2, 4  ;;  %s423_s3 = int_to_ptr.vmem [resolvable:$true] %s422_s3 }
  0x1c   :  { %456 = vmatpush3.msk.msra.mxu1 %vm331_vm7, %v319_v37  ;;  %s491_s12 = scalar_lea.vmem %s423_s3, 32  ;;  %p496_p6 = scmp.lt.s32.totalorder %s423_s3, %s423_s3 }
  0x1d   :  { %80 = vadd.xlane.f32.xlu1 %v79_v22  ;;  %p492_p5 = scmp.ne.s32.totalorder %s423_s3, %s491_s12  ;;  %p497_p7 = scmp.lt.s32.totalorder %s491_s12, %s491_s12 }
  0x1e   :  { %68 = vadd.xlane.f32.xlu0 %v67_v23 }
  0x1f   :  { %p498_p8 = por %p497_p7, %p496_p6 }
  0x21   :  { %94 = vmax.xlane.f32.xlu1 %v93_v24  ;;  %p499_p9 = pnand %p498_p8, %p492_p5 }
  0x22   :  { %91 = vmax.xlane.f32.xlu0 %v90_v25 }
  0x25   :  { %106 = vmax.xlane.f32.xlu1 %v105_v26 }
  0x26   :  { %103 = vmax.xlane.f32.xlu0 %v102_v27 }
  0x29   :  { %109 = vmax.xlane.f32.xlu1 %v108_v29 }
  0x2a   :  { %97 = vmax.xlane.f32.xlu0 %v96_v30 }
  0x2d   :  { %112 = vmax.xlane.f32.xlu1 %v111_v31 }
  0x2e   :  { %100 = vmax.xlane.f32.xlu0 %v99_v32  ;;  %v175_v32 = vld [vmem:[#allocation2 + $0x2] sm:$0x3] }
  0x9a   :  { %v72_v40 = vpop.xlane.xlu1 %71 }
  0x9b   :  { %v60_v41 = vpop.xlane.xlu0 %59  ;;  %v153_v57 = vrot.slane %v72_v40, %v127_v50 }
  0x9c   :  { %v128_v59 = vrot.slane %v60_v41, %v127_v50 }
  0x9e   :  { %v75_v45 = vpop.xlane.xlu1 %74 }
  0x9f   :  { %v63_v47 = vpop.xlane.xlu0 %62  ;;  %v157_v52 = vrot.slane %v75_v45, %v132_v46 }
  0xa0   :  { %v133_v55 = vrot.slane %v63_v47, %v132_v46 }
  0xa1   :  { %v158_v61 = vsel %vm134_vm2, %v157_v52, %v153_v57 }
  0xa2   :  { %v78_v51 = vpop.xlane.xlu1 %77  ;;  %v135_v0 = vsel %vm134_vm2, %v133_v55, %v128_v59 }
  0xa3   :  { %v66_v53 = vpop.xlane.xlu0 %65  ;;  %v162_v56 = vrot.slane %v78_v51, %v139_v49 }
  0xa4   :  { %v140_v58 = vrot.slane %v66_v53, %v139_v49 }
  0xa5   :  { %v163_v1 = vsel %vm141_vm3, %v162_v56, %v158_v61 }
  0xa6   :  { %v81_v60 = vpop.xlane.xlu1 %80  ;;  %v142_v3 = vsel %vm141_vm3, %v140_v58, %v135_v0 }
  0xa7   :  { %v167_v62 = vrot.slane %v81_v60, %v146_v54  ;;  %v69_v63 = vpop.xlane.xlu0 %68 }
  0xa8   :  { %v147_v2 = vrot.slane %v69_v63, %v146_v54 }
  0xa9   :  { %v168_v4 = vsel %vm148_vm4, %v167_v62, %v163_v1 }
  0xaa   :  { %v149_v6 = vsel %vm148_vm4, %v147_v2, %v142_v3  ;;  %v95_v7 = vpop.xlane.xlu1 %94 }
  0xab   :  { %v170_v8 = vsel %vm169_vm5, %v168_v4, %v149_v6  ;;  %v92_v9 = vpop.xlane.xlu0 %91  ;;  %v191_v17 = vrot.slane %v95_v7, %v132_v46 }
  0xac   :  { %v172_v10 = vadd.f32 %v170_v8, %v114_v5  ;;  %v187_v18 = vrot.slane %v92_v9, %v127_v50 }
  0xae   :  { %174 = vst.msk [vmem:[#allocation2] sm:$0x3] %vm39_vm0, %v172_v10  ;;  %v107_v11 = vpop.xlane.xlu1 %106  ;;  %v192_v27 = vsel %vm134_vm2, %v191_v17, %v187_v18 }
  0xaf   :  { %v104_v12 = vpop.xlane.xlu0 %103  ;;  %v210_v14 = vrot.slane %v107_v11, %v132_v46 }
  0xb0   :  { %v206_v15 = vrot.slane %v104_v12, %v127_v50 }
  0xb2   :  { %v110_v13 = vpop.xlane.xlu1 %109  ;;  %v211_v24 = vsel %vm134_vm2, %v210_v14, %v206_v15 }
  0xb3   :  { %v98_v16 = vpop.xlane.xlu0 %97  ;;  %v215_v19 = vrot.slane %v110_v13, %v139_v49 }
  0xb4   :  { %v196_v21 = vrot.slane %v98_v16, %v139_v49 }
  0xb5   :  { %v229_v20 = vld [vmem:[#allocation2] sm:$0x3]  ;;  %v216_v28 = vsel %vm141_vm3, %v215_v19, %v211_v24 }
  0xb6   :  { %v230_v22 = vmul.f32 0.00390625, %v229_v20  ;;  %v113_v23 = vpop.xlane.xlu1 %112  ;;  %v197_v30 = vsel %vm141_vm3, %v196_v21, %v192_v27 }
  0xb7   :  { %v220_v25 = vrot.slane %v113_v23, %v146_v54  ;;  %v101_v26 = vpop.xlane.xlu0 %100 }
  0xb8   :  { %231 = vst.msk [vmem:[#allocation2] sm:$0x3] %vm39_vm0, %v230_v22  ;;  %v201_v29 = vrot.slane %v101_v26, %v146_v54 }
  0xb9   :  { %v221_v31 = vsel %vm148_vm4, %v220_v25, %v216_v28 }
  0xba   :  { %v202_v33 = vsel %vm148_vm4, %v201_v29, %v197_v30 }
  0xbb   :  { %v222_v34 = vsel %vm169_vm5, %v221_v31, %v202_v33 }
  0xbc   :  { %v224_v35 = vmax.f32 %v175_v32, %v222_v34 }
  0xbe   :  { %225 = vst.msk [vmem:[#allocation2 + $0x2] sm:$0x3] %vm39_vm0, %v224_v35 }
  0xc5   :  { %v232_v36 = vld [vmem:[#allocation2] sm:$0xf] }
  0xc6   :  { %453 = vmatmul.mubr.msk.f32.vlgmr.msra.gmra.mxu0 %vm244_vm6, %v232_v36 }
 0x186   :  { %v314_v39 = vpop.f32.mrf.mxu0 }
 0x187   :  { %v315_v40 = vadd.f32 %v431_v38, %v314_v39 }
 0x188   :  { %v454_v41 = vpop.f32.mrf.mxu0 }
 0x189   :  { %v318_v42 = vmax.f32 %v315_v40, 0.0 }
 0x18b   :  { %458 = vmatmul.mubr.msk.f32.vlgmr.msra.gmra.mxu1 %vm327_vm8, %v318_v42 }
 0x24b   :  { %v401_v44 = vpop.f32.mrf.mxu1 }
 0x24c   :  { %v402_v45 = vadd.f32 %v433_v43, %v401_v44 }
 0x24d   :  { %v459_v46 = vpop.f32.mrf.mxu1 }
 0x24e   :  { %v436_v47 = vmul.f32 -1.442695, %v402_v45 }
 0x250   :  { %467 = vpow2.f32 %v436_v47 }
 0x25d   :  { %v468_v48 = vpop.eup %467 }
 0x25e   :  { %v408_v49 = vadd.f32 1.0, %v468_v48 }
 0x260   :  { %469 = vrcp.f32 %v408_v49 }
 0x26d   :  { %v470_v50 = vpop.eup %469 }
 0x26e   :  { %v412_v51 = vrot.slane %v470_v50, 2 }
 0x270   :  { %v414_v52 = vadd.f32 %v470_v50, %v412_v51 }
 0x272   :  { %415 = vst.msk [vmem:[#allocation6] sm:$0x3] %vm39_vm0, %v414_v52 }
 0x273   :  { %502 = shalt.err (!%p499_p9)
}
 0x274   :  { %425 = dma.vmem_to_hbm [thread:$0]  %s423_s3, 32, %s604_s5, [#allocation5]  }
 0x275   :  { %513 = dma.done.wait [#allocation5], 32  }
 0x276   :  { %514 = vsyncadd [#allocation5], 4294967264 }
 0x277   :  { %429 = vsyncpa [#allocation4], 1 }
 0x278   :  { %430 = vsyncpa [#allocation5], 1 }

</bundles_post_ra>
